<compile_context>
chip_gen: v7x
topology: tpu7x:2x2x1
jax: 0.10.0
libtpu: 0.0.40
codegen_flags: <defaults>
</compile_context>

<pallas_src>
from functools import partial

import jax
import jax.numpy as jnp
from jax.experimental import pallas as pl
from jax.experimental.pallas import tpu as pltpu


def _round_up(a: int, b: int) -> int:
    return (a + b - 1) // b * b


def _device_kind() -> str:
    try:
        return jax.devices()[0].device_kind.lower()
    except Exception:
        return ""


def _pick_tiles(kind: str):
    if "v7" in kind:
        return 512, 256
    if "v6" in kind:
        return 1024, 512
    if "v5" in kind:
        return 256, 256
    return 512, 512


def _vmem_cap_bytes(kind: str) -> int:
    # Stay below physical VMEM: 64 MiB/TC on v7x, 128 MiB on v5e/v6e.
    return (60 << 20) if "v7" in kind else (110 << 20)


def _footprint_bytes(tm, tf, H, x_bytes, cd_bytes, out_bytes, use_acc):
    b = 2 * tm * H * x_bytes          # x row tile, double-buffered
    b += 2 * H * tf * cd_bytes        # W1 F-slice, double-buffered
    b += 2 * tf * H * cd_bytes        # Wo F-slice, double-buffered
    b += 2 * tm * H * out_bytes       # output tile, double-buffered
    if use_acc:
        b += tm * H * 4               # f32 accumulator scratch
    return b


def _gelu_f32(h, approx: bool):
    if approx:
        # tanh approximation: goes to the EUP slot instead of a ~20-op erf
        # polynomial on the VPU.  Slight accuracy delta vs torch's exact gelu.
        c = jnp.float32(0.7978845608028654)  # sqrt(2/pi)
        return 0.5 * h * (1.0 + jnp.tanh(c * (h + jnp.float32(0.044715) * h * h * h)))
    inv_sqrt2 = jnp.float32(0.7071067811865476)
    return 0.5 * h * (1.0 + jax.lax.erf(h * inv_sqrt2))


def _make_kernel(use_acc: bool, approx_gelu: bool):
    """out = gelu(x @ W1) @ Wo, reduced over F tiles (grid axis 1)."""
    if use_acc:
        def kernel(x_ref, w1_ref, wo_ref, o_ref, acc_ref):
            f = pl.program_id(1)

            @pl.when(f == 0)
            def _():
                acc_ref[...] = jnp.zeros_like(acc_ref)

            x = x_ref[...].astype(w1_ref.dtype)                       # (tm, H)
            h = jnp.dot(x, w1_ref[...], preferred_element_type=jnp.float32)
            g = _gelu_f32(h, approx_gelu)                             # (tm, tf)
            acc_ref[...] += jnp.dot(g.astype(wo_ref.dtype), wo_ref[...],
                                    preferred_element_type=jnp.float32)

            @pl.when(f == pl.num_programs(1) - 1)
            def _():
                o_ref[...] = acc_ref[...].astype(o_ref.dtype)
    else:
        # float32 output: accumulate directly into the resident output block.
        def kernel(x_ref, w1_ref, wo_ref, o_ref):
            f = pl.program_id(1)
            x = x_ref[...].astype(w1_ref.dtype)                       # (tm, H)
            h = jnp.dot(x, w1_ref[...], preferred_element_type=jnp.float32)
            g = _gelu_f32(h, approx_gelu)                             # (tm, tf)
            contrib = jnp.dot(g.astype(wo_ref.dtype), wo_ref[...],
                              preferred_element_type=jnp.float32)     # (tm, H)

            @pl.when(f == 0)
            def _():
                o_ref[...] = contrib

            @pl.when(f != 0)
            def _():
                o_ref[...] += contrib
    return kernel


def prepare_weights(w1, wo, compute_dtype=jnp.bfloat16, f_align=512):
    """One-time layout fix, off the hot path.

    torch weights: w1 (F, H) = nn.Linear(H, F).weight, wo (H, F).
    Returns (H, F_pad) / (F_pad, H) in compute_dtype with F zero-padded to a
    multiple of f_align.  Zero columns of W1 give h=0 -> gelu(0)=0, and the
    matching zero rows of Wo contribute exactly 0, so results are unchanged.
    """
    F, H = w1.shape
    assert wo.shape == (H, F)
    w1_t = jnp.asarray(w1).T.astype(compute_dtype)   # (H, F)
    wo_t = jnp.asarray(wo).T.astype(compute_dtype)   # (F, H)
    F_pad = _round_up(F, f_align)
    if F_pad != F:
        w1_t = jnp.pad(w1_t, ((0, 0), (0, F_pad - F)))
        wo_t = jnp.pad(wo_t, ((0, F_pad - F), (0, 0)))
    return w1_t, wo_t


@partial(jax.jit, static_argnames=("tm", "tf", "approx_gelu"))
def dense_act_dense(x, w1_t, wo_t, *, tm=None, tf=None, approx_gelu=False):
    """x: (B, S, H); w1_t: (H, F); wo_t: (F, H) (prepared via prepare_weights)."""
    B, S, H = x.shape
    Hw, F = w1_t.shape
    assert Hw == H and wo_t.shape == (F, H)

    kind = _device_kind()
    tm_def, tf_def = _pick_tiles(kind)
    tm = tm_def if tm is None else tm
    tf = tf_def if tf is None else tf

    compute_dtype = w1_t.dtype
    out_dtype = x.dtype
    use_acc = jnp.dtype(out_dtype) != jnp.dtype(jnp.float32)
    M = B * S

    # ---- F tile: must divide F (prepare_weights pads F to a 512 multiple). ----
    tf_eff = min(tf, F)
    if F % tf_eff != 0:
        tf_eff = 0
        cand = (min(tf, F) // 128) * 128
        while cand >= 128:
            if F % cand == 0:
                tf_eff = cand
                break
            cand -= 128
        if tf_eff == 0:
            raise ValueError(
                f"F={F} is not a multiple of 128; pad the weights with "
                "prepare_weights() before calling dense_act_dense().")

    # ---- Row tile: clamp for small M; on v7x ensure >=2 tiles (2 TCs). ----
    tm_eff = min(tm, _round_up(M, 8))
    if "v7" in kind and M > 8 and pl.cdiv(M, tm_eff) < 2:
        tm_eff = _round_up(pl.cdiv(M, 2), 8)

    # ---- Fit the double-buffered footprint under the per-chip VMEM cap. ----
    x_bytes = jnp.dtype(x.dtype).itemsize
    cd_bytes = jnp.dtype(compute_dtype).itemsize
    out_bytes = jnp.dtype(out_dtype).itemsize
    cap = _vmem_cap_bytes(kind)
    while (tm_eff > 8 and
           _footprint_bytes(tm_eff, tf_eff, H, x_bytes, cd_bytes, out_bytes,
                            use_acc) > cap):
        tm_eff = max(8, _round_up(tm_eff // 2, 8))
    footprint = _footprint_bytes(tm_eff, tf_eff, H, x_bytes, cd_bytes,
                                 out_bytes, use_acc)
    vmem_limit = min(cap, max(int(footprint * 1.15) + (2 << 20), 32 << 20))

    grid = (pl.cdiv(M, tm_eff), F // tf_eff)

    x2 = x.reshape(M, H)   # free reshape; bf16 cast happens inside the kernel

    cost = pl.CostEstimate(
        flops=4 * M * H * F,                               # two matmuls
        transcendentals=M * F,                             # gelu per ffn elem
        bytes_accessed=(M * H * x_bytes                    # x in
                        + grid[0] * 2 * H * F * cd_bytes   # weights re-streamed
                        + M * H * out_bytes),              # out
    )

    scratch = [pltpu.VMEM((tm_eff, H), jnp.float32)] if use_acc else []

    out = pl.pallas_call(
        _make_kernel(use_acc, approx_gelu),
        out_shape=jax.ShapeDtypeStruct((M, H), out_dtype),
        grid_spec=pltpu.PrefetchScalarGridSpec(
            num_scalar_prefetch=0,
            grid=grid,
            in_specs=[
                pl.BlockSpec((tm_eff, H), lambda i, f: (i, 0)),   # x row tile
                pl.BlockSpec((H, tf_eff), lambda i, f: (0, f)),   # W1 F-slice
                pl.BlockSpec((tf_eff, H), lambda i, f: (f, 0)),   # Wo F-slice
            ],
            out_specs=pl.BlockSpec((tm_eff, H), lambda i, f: (i, 0)),
            scratch_shapes=scratch,
        ),
        compiler_params=pltpu.CompilerParams(
            dimension_semantics=("parallel", "arbitrary"),
            vmem_limit_bytes=vmem_limit),
        cost_estimate=cost,
    )(x2, w1_t, wo_t)

    return out.reshape(B, S, H)


def _torch_linear_init(key, out_features, in_features):
    """Deterministic stand-in for nn.Linear default init: U(-k, k), k=1/sqrt(in)."""
    bound = 1.0 / jnp.sqrt(jnp.float32(in_features))
    return jax.random.uniform(
        key, (out_features, in_features), dtype=jnp.float32,
        minval=-bound, maxval=bound)


if __name__ == "__main__":
    # Small shapes consistent with the module: hidden_size=32, alternative=4.
    B, S, H, ALT = 2, 8, 32, 4
    F = H * ALT  # 128

    key = jax.random.PRNGKey(0)
    kx, kw1, kwo = jax.random.split(key, 3)

    x = jax.random.normal(kx, (B, S, H), dtype=jnp.float32)
    w1 = _torch_linear_init(kw1, F, H)   # nn.Linear(H, F, bias=False).weight: (F, H)
    wo = _torch_linear_init(kwo, H, F)   # nn.Linear(F, H, bias=False).weight: (H, F)

    # One-time weight prep (transpose + bf16 cast + F padding), off the hot path.
    w1_t, wo_t = prepare_weights(w1, wo)

    out = dense_act_dense(x, w1_t, wo_t)
    out = jax.block_until_ready(out)

    # Pure-JAX reference on the same bf16-operand / f32-accumulation contract
    # (dropout is identity at inference; padded F columns contribute 0).
    xb = x.reshape(B * S, H).astype(jnp.bfloat16)
    h_ref = jnp.dot(xb, w1_t, preferred_element_type=jnp.float32)
    g_ref = 0.5 * h_ref * (1.0 + jax.lax.erf(h_ref * jnp.float32(0.7071067811865476)))
    ref = jnp.dot(g_ref.astype(jnp.bfloat16), wo_t,
                  preferred_element_type=jnp.float32).astype(x.dtype)
    ref = ref.reshape(B, S, H)

    assert out.shape == (B, S, H)
    assert jnp.allclose(out, ref, atol=2e-2, rtol=2e-2), "mismatch vs reference"

    print("KERNEL_OK")
</pallas_src>

<mosaic_0001>
module attributes {stable_mosaic.version = 11 : i64} {
  func.func @kernel(%arg0: i32, %arg1: i32, %arg2: memref<16x32xf32, #tpu.memory_space<vmem>>, %arg3: memref<32x512xbf16, #tpu.memory_space<vmem>>, %arg4: memref<512x32xbf16, #tpu.memory_space<vmem>>, %arg5: memref<16x32xf32, #tpu.memory_space<vmem>>) attributes {dimension_semantics = [#tpu.dimension_semantics<parallel>, #tpu.dimension_semantics<arbitrary>], iteration_bounds = array<i64: 1, 1>, scalar_prefetch = 0 : i64, scratch_operands = 0 : i64, tpu.core_type = #tpu.core_type<tc>, window_params = [{transform_indices = @transform_0, window_bounds = array<i64: 16, 32>}, {transform_indices = @transform_1, window_bounds = array<i64: 32, 512>}, {transform_indices = @transform_2, window_bounds = array<i64: 512, 32>}, {transform_indices = @transform_3, window_bounds = array<i64: 16, 32>}]} {
    %c0 = arith.constant 0 : index
    %c0_0 = arith.constant 0 : index
    %0 = vector.load %arg2[%c0, %c0_0] : memref<16x32xf32, #tpu.memory_space<vmem>>, vector<16x32xf32>
    %1 = arith.truncf %0 : vector<16x32xf32> to vector<16x32xbf16>
    %c0_1 = arith.constant 0 : index
    %c0_2 = arith.constant 0 : index
    %2 = vector.load %arg3[%c0_1, %c0_2] : memref<32x512xbf16, #tpu.memory_space<vmem>>, vector<32x512xbf16>
    %cst = arith.constant dense<0.000000e+00> : vector<16x512xf32>
    %3 = tpu.matmul %1, %2, %cst {dimension_numbers = #tpu.dot_dimension_numbers<[1], [0], [0], [1], [0, 0, 1, 1], [], []>} : vector<16x32xbf16>, vector<32x512xbf16>, vector<16x512xf32> -> vector<16x512xf32>
    %cst_3 = arith.constant 5.000000e-01 : f32
    %4 = vector.broadcast %cst_3 : f32 to vector<16x512xf32>
    %5 = arith.mulf %4, %3 : vector<16x512xf32>
    %cst_4 = arith.constant 0.707106769 : f32
    %6 = vector.broadcast %cst_4 : f32 to vector<16x512xf32>
    %7 = arith.mulf %3, %6 : vector<16x512xf32>
    %8 = math.erf %7 : vector<16x512xf32>
    %cst_5 = arith.constant 1.000000e+00 : f32
    %9 = vector.broadcast %cst_5 : f32 to vector<16x512xf32>
    %10 = arith.addf %9, %8 : vector<16x512xf32>
    %11 = arith.mulf %5, %10 : vector<16x512xf32>
    %12 = arith.truncf %11 : vector<16x512xf32> to vector<16x512xbf16>
    %c0_6 = arith.constant 0 : index
    %c0_7 = arith.constant 0 : index
    %13 = vector.load %arg4[%c0_6, %c0_7] : memref<512x32xbf16, #tpu.memory_space<vmem>>, vector<512x32xbf16>
    %cst_8 = arith.constant dense<0.000000e+00> : vector<16x32xf32>
    %14 = tpu.matmul %12, %13, %cst_8 {dimension_numbers = #tpu.dot_dimension_numbers<[1], [0], [0], [1], [0, 0, 1, 1], [], []>} : vector<16x512xbf16>, vector<512x32xbf16>, vector<16x32xf32> -> vector<16x32xf32>
    %c0_i32 = arith.constant 0 : i32
    %15 = arith.cmpi eq, %arg1, %c0_i32 : i32
    %16 = arith.extui %15 : i1 to i32
    %c0_i32_9 = arith.constant 0 : i32
    %17 = arith.cmpi ne, %16, %c0_i32_9 : i32
    scf.if %17 {
      %c0_12 = arith.constant 0 : index
      %c0_13 = arith.constant 0 : index
      %21 = vector.load %arg5[%c0_12, %c0_13] : memref<16x32xf32, #tpu.memory_space<vmem>>, vector<16x32xf32>
      tpu.vector_store %arg5[%c0_12, %c0_13], %14 {strides = array<i32>} : memref<16x32xf32, #tpu.memory_space<vmem>>, vector<16x32xf32>,
    } else {
    }
    %c0_i32_10 = arith.constant 0 : i32
    %18 = arith.cmpi ne, %arg1, %c0_i32_10 : i32
    %19 = arith.extui %18 : i1 to i32
    %c0_i32_11 = arith.constant 0 : i32
    %20 = arith.cmpi ne, %19, %c0_i32_11 : i32
    scf.if %20 {
      %c0_12 = arith.constant 0 : index
      %c0_13 = arith.constant 0 : index
      %21 = vector.load %arg5[%c0_12, %c0_13] : memref<16x32xf32, #tpu.memory_space<vmem>>, vector<16x32xf32>
      %22 = arith.addf %21, %14 : vector<16x32xf32>
      %c0_14 = arith.constant 0 : index
      %c0_15 = arith.constant 0 : index
      %23 = vector.load %arg5[%c0_14, %c0_15] : memref<16x32xf32, #tpu.memory_space<vmem>>, vector<16x32xf32>
      tpu.vector_store %arg5[%c0_14, %c0_15], %22 {strides = array<i32>} : memref<16x32xf32, #tpu.memory_space<vmem>>, vector<16x32xf32>,
    } else {
    }
    return
  }
  func.func @transform_0(%arg0: i32, %arg1: i32) -> (i32, i32) {
    %c0_i32 = arith.constant 0 : i32
    %c0_i32_0 = arith.constant 0 : i32
    return %arg0, %c0_i32 : i32, i32
  }
  func.func @transform_1(%arg0: i32, %arg1: i32) -> (i32, i32) {
    %c0_i32 = arith.constant 0 : i32
    %c0_i32_0 = arith.constant 0 : i32
    return %c0_i32, %arg1 : i32, i32
  }
  func.func @transform_2(%arg0: i32, %arg1: i32) -> (i32, i32) {
    %c0_i32 = arith.constant 0 : i32
    %c0_i32_0 = arith.constant 0 : i32
    return %arg1, %c0_i32 : i32, i32
  }
  func.func @transform_3(%arg0: i32, %arg1: i32) -> (i32, i32) {
    %c0_i32 = arith.constant 0 : i32
    %c0_i32_0 = arith.constant 0 : i32
    return %arg0, %c0_i32 : i32, i32
  }
}

</mosaic_0001>

<bundles_post_ra>
// kernel: dense_act_dense.1
= control target key start
LH: loop header
LB: loop body
LE: loop exit
PB: predicated region body
PF: predicated region fallthrough
CT: control target
= control target key end

     0   :  { %v745_v2 = vmov 0   ;;  %vm67_vm0 = vcmask 261120   ;;  %s911_s0 = inlined_call_operand.vmem [shape: f32[16,32], index: 0, kind: input, shape index: {}]   ;;  %s912_s1 = inlined_call_operand.vmem [shape: bf16[32,512], index: 1, kind: input, shape index: {}]   ;;  %s913_s2 = inlined_call_operand.vmem [shape: bf16[512,32], index: 2, kind: input, shape index: {}]   ;;  %s914_s3 = inlined_call_operand.hbm [shape: f32[16,32], index: 3, kind: output, shape index: {}]  }
   0x1   :  { %v661_v0 = vld [vmem:[%s912_s1 + $0x4] ss:$16 sps:$4 sm:$0xff]   ;;  %v663_v1 = vld [vmem:[%s912_s1 + $0xc] ss:$16 sps:$4 sm:$0xff]   ;;  %103 = vmatprep.mubr.bf16.mxu0 %v745_v2  ;;  %146 = vmatprep.mubr.bf16.mxu1 %v745_v2  ;;  %v665_v3 = vld [vmem:[%s912_s1] ss:$16 sps:$4 sm:$0xff]  }
   0x2   :  { %71 = vmatprep.subr.bf16.mxu0 %v661_v0  ;;  %v666_v4 = vld [vmem:[%s912_s1 + $0x8] ss:$16 sps:$4 sm:$0xff]   ;;  %114 = vmatprep.subr.bf16.mxu1 %v663_v1  ;;  %v667_v5 = vld [vmem:[%s912_s1 + $0x24] ss:$16 sps:$4 sm:$0xff]   ;;  %v669_v6 = vld [vmem:[%s912_s1 + $0x2c] ss:$16 sps:$4 sm:$0xff]  }
   0x3   :  { %72 = vmatpush1.bf16.msra.mxu0 %v665_v3  ;;  %115 = vmatpush1.bf16.msra.mxu1 %v666_v4  ;;  %v671_v7 = vld [vmem:[%s912_s1 + $0x20] ss:$16 sps:$4 sm:$0xff]   ;;  %v672_v8 = vld [vmem:[%s912_s1 + $0x28] ss:$16 sps:$4 sm:$0xff]  }
   0x4   :  { %73 = vmatprep.subr.bf16.mxu0 %v667_v5  ;;  %v16_v9 = vld [vmem:[%s911_s0] sm:$0xff]  ;;  %v17_v10 = vld [vmem:[%s911_s0 + $0x8] sm:$0xff]  ;;  %116 = vmatprep.subr.bf16.mxu1 %v669_v6 }
   0x5   :  { %v673_v11 = vld [vmem:[%s913_s2 + $0x40] sm:$0xff]   ;;  %v18_v12 = vpack.c.bf16 %v17_v10, %v16_v9  ;;  %v677_v16 = vld [vmem:[%s913_s2 + $0x48] sm:$0xff]  }
   0x6   :  { %v674_v13 = vld [vmem:[%s913_s2 + $0xc0] sm:$0xff]   ;;  %v678_v17 = vld [vmem:[%s913_s2 + $0xc8] sm:$0xff]  }
   0x7   :  { %74 = vmatpush1.bf16.msra.mxu0 %v671_v7  ;;  %117 = vmatpush1.bf16.msra.mxu1 %v672_v8  ;;  %v675_v14 = vld [vmem:[%s913_s2] sm:$0xff]   ;;  %v679_v18 = vld [vmem:[%s913_s2 + $0x8] sm:$0xff]  }
   0x8   :  { %613 = vmatprep.subr.bf16.mxu0 %v673_v11  ;;  %635 = vmatprep.subr.bf16.mxu1 %v674_v13  ;;  %v676_v15 = vld [vmem:[%s913_s2 + $0x80] sm:$0xff]   ;;  %v680_v19 = vld [vmem:[%s913_s2 + $0x88] sm:$0xff]  }
   0xa   :  { %579 = vmatmul.mubr.msk.bf16.vlgmr.msra.gmra.mrb[0].mxu0 %vm67_vm0, %v18_v12  ;;  %580 = vmatmul.mubr.msk.bf16.vlgmr.msra.gmra.mrb[0].mxu1 %vm67_vm0, %v18_v12 }
   0xb   :  { %614 = vmatpush3.bf16.msra.mxu0 %v675_v14  ;;  %636 = vmatpush3.bf16.msra.mxu1 %v676_v15 }
   0xc   :  { %615 = vmatprep.subr.bf16.mxu0 %v677_v16  ;;  %637 = vmatprep.subr.bf16.mxu1 %v678_v17 }
   0xf   :  { %616 = vmatpush3.bf16.msra.mxu0 %v679_v18  ;;  %638 = vmatpush3.bf16.msra.mxu1 %v680_v19 }
  0x10   :  { %8 = vsyncpa [#allocation3], 0  ;;  %v681_v20 = vld [vmem:[%s913_s2 + $0x50] sm:$0xff]   ;;  %v685_v24 = vld [vmem:[%s913_s2 + $0x58] sm:$0xff]  }
  0x11   :  { %v682_v21 = vld [vmem:[%s913_s2 + $0xd0] sm:$0xff]   ;;  %617 = vmatprep.subr.bf16.mxu0 %v681_v20  ;;  %v686_v25 = vld [vmem:[%s913_s2 + $0xd8] sm:$0xff]   ;;  %v689_v28 = vld [vmem:[%s913_s2 + $0x60] sm:$0xff]  }
  0x12   :  { %639 = vmatprep.subr.bf16.mxu1 %v682_v21  ;;  %v683_v22 = vld [vmem:[%s913_s2 + $0x10] sm:$0xff]   ;;  %v687_v26 = vld [vmem:[%s913_s2 + $0x18] sm:$0xff]   ;;  %v690_v29 = vld [vmem:[%s913_s2 + $0xe0] sm:$0xff]  }
  0x13   :  { %v684_v23 = vld [vmem:[%s913_s2 + $0x90] sm:$0xff]   ;;  %618 = vmatpush3.bf16.msra.mxu0 %v683_v22  ;;  %v688_v27 = vld [vmem:[%s913_s2 + $0x98] sm:$0xff]   ;;  %v691_v30 = vld [vmem:[%s913_s2 + $0x20] sm:$0xff]  }
  0x14   :  { %640 = vmatpush3.bf16.msra.mxu1 %v684_v23  ;;  %619 = vmatprep.subr.bf16.mxu0 %v685_v24  ;;  %v692_v31 = vld [vmem:[%s913_s2 + $0xa0] sm:$0xff]   ;;  %v693_v32 = vld [vmem:[%s913_s2 + $0x68] sm:$0xff]   ;;  %v697_v36 = vld [vmem:[%s913_s2 + $0x70] sm:$0xff]  }
  0x15   :  { %641 = vmatprep.subr.bf16.mxu1 %v686_v25  ;;  %v694_v33 = vld [vmem:[%s913_s2 + $0xe8] sm:$0xff]   ;;  %v698_v37 = vld [vmem:[%s913_s2 + $0xf0] sm:$0xff]   ;;  %v701_v40 = vld [vmem:[%s913_s2 + $0x78] sm:$0xff]  }
  0x16   :  { %v695_v34 = vld [vmem:[%s913_s2 + $0x28] sm:$0xff]   ;;  %v699_v38 = vld [vmem:[%s913_s2 + $0x30] sm:$0xff]   ;;  %v702_v41 = vld [vmem:[%s913_s2 + $0xf8] sm:$0xff]  }
  0x17   :  { %620 = vmatpush3.bf16.msra.mxu0 %v687_v26  ;;  %v696_v35 = vld [vmem:[%s913_s2 + $0xa8] sm:$0xff]   ;;  %v700_v39 = vld [vmem:[%s913_s2 + $0xb0] sm:$0xff]   ;;  %v703_v42 = vld [vmem:[%s913_s2 + $0x38] sm:$0xff]  }
  0x18   :  { %642 = vmatpush3.bf16.msra.mxu1 %v688_v27  ;;  %621 = vmatprep.subr.bf16.mxu0 %v689_v28  ;;  %v704_v43 = vld [vmem:[%s913_s2 + $0xb8] sm:$0xff]   ;;  %s746_s2 = smov [#allocation2]  }
  0x19   :  { %643 = vmatprep.subr.bf16.mxu1 %v690_v29  ;;  %s560_s0 = sshll.u32 %s746_s2, 4  ;;  %s561_s0 = int_to_ptr.vmem [resolvable:$true] %s560_s0 }
  0x1a   :  { %s721_s10 = scalar_lea.vmem %s561_s0, 256  ;;  %p726_p1 = scmp.lt.s32.totalorder %s561_s0, %s561_s0 }
  0x1b   :  { %622 = vmatpush3.bf16.msra.mxu0 %v691_v30  ;;  %p722_p0 = scmp.ne.s32.totalorder %s561_s0, %s721_s10  ;;  %p727_p2 = scmp.lt.s32.totalorder %s721_s10, %s721_s10 }
  0x1c   :  { %644 = vmatpush3.bf16.msra.mxu1 %v692_v31  ;;  %623 = vmatprep.subr.bf16.mxu0 %v693_v32 }
  0x1d   :  { %645 = vmatprep.subr.bf16.mxu1 %v694_v33  ;;  %p728_p3 = por %p727_p2, %p726_p1 }
  0x1f   :  { %624 = vmatpush3.bf16.msra.mxu0 %v695_v34  ;;  %p729_p4 = pnand %p728_p3, %p722_p0 }
  0x20   :  { %646 = vmatpush3.bf16.msra.mxu1 %v696_v35  ;;  %625 = vmatprep.subr.bf16.mxu0 %v697_v36 }
  0x21   :  { %647 = vmatprep.subr.bf16.mxu1 %v698_v37 }
  0x23   :  { %626 = vmatpush3.bf16.msra.mxu0 %v699_v38 }
  0x24   :  { %648 = vmatpush3.bf16.msra.mxu1 %v700_v39  ;;  %627 = vmatprep.subr.bf16.mxu0 %v701_v40 }
  0x25   :  { %649 = vmatprep.subr.bf16.mxu1 %v702_v41 }
  0x27   :  { %628 = vmatpush3.bf16.msra.mxu0 %v703_v42 }
  0x28   :  { %650 = vmatpush3.bf16.msra.mxu1 %v704_v43 }
  0xdd   :  { %v105_v44 = vpop.f32.mrb[0].mxu0  ;;  %v148_v45 = vpop.f32.mrb[0].mxu1 }
  0xde   :  { %v165_v46 = vmul.f32 0.70710677, %v105_v44  ;;  %v167_v47 = vmul.f32 0.70710677, %v148_v45  ;;  %v107_v48 = vpop.f32.mrb[1].mxu0  ;;  %v150_v49 = vpop.f32.mrb[1].mxu1 }
  0xdf   :  { %v166_v50 = vmul.f32 0.70710677, %v107_v48  ;;  %v109_v51 = vpop.f32.mrb[2].mxu0  ;;  %v152_v52 = vpop.f32.mrb[2].mxu1  ;;  %v168_v53 = vmul.f32 0.70710677, %v150_v49 }
  0xe0   :  { %705 = verf.f32 %v165_v46  ;;  %v169_v54 = vmul.f32 0.70710677, %v109_v51  ;;  %v111_v55 = vpop.f32.mrb[3].mxu0  ;;  %v171_v56 = vmul.f32 0.70710677, %v152_v52  ;;  %v154_v57 = vpop.f32.mrb[3].mxu1 }
  0xe1   :  { %707 = verf.f32 %v167_v47  ;;  %v170_v58 = vmul.f32 0.70710677, %v111_v55  ;;  %v172_v59 = vmul.f32 0.70710677, %v154_v57  ;;  %v157_v2 = vmul.f32 0.5, %v105_v44 }
  0xe2   :  { %709 = verf.f32 %v166_v50  ;;  %v159_v3 = vmul.f32 0.5, %v148_v45  ;;  %v158_v6 = vmul.f32 0.5, %v107_v48  ;;  %v161_v8 = vmul.f32 0.5, %v109_v51 }
  0xe3   :  { %711 = verf.f32 %v168_v53  ;;  %v160_v11 = vmul.f32 0.5, %v150_v49  ;;  %v163_v13 = vmul.f32 0.5, %v152_v52  ;;  %v162_v18 = vmul.f32 0.5, %v111_v55 }
  0xe4   :  { %713 = verf.f32 %v169_v54  ;;  %v164_v22 = vmul.f32 0.5, %v154_v57 }
  0xe5   :  { %715 = verf.f32 %v171_v56 }
  0xe6   :  { %717 = verf.f32 %v170_v58 }
  0xe7   :  { %719 = verf.f32 %v172_v59 }
  0xea   :  { %v706_v60 = vpop.eup %705 }
  0xeb   :  { %v708_v61 = vpop.eup %707  ;;  %v181_v0 = vadd.f32 1.0, %v706_v60 }
  0xec   :  { %v710_v62 = vpop.eup %709  ;;  %v183_v4 = vadd.f32 1.0, %v708_v61 }
  0xed   :  { %v712_v63 = vpop.eup %711  ;;  %v182_v7 = vadd.f32 1.0, %v710_v62  ;;  %v189_v16 = vmul.f32 %v181_v0, %v157_v2 }
  0xee   :  { %v714_v1 = vpop.eup %713  ;;  %v184_v12 = vadd.f32 1.0, %v712_v63  ;;  %v191_v20 = vmul.f32 %v183_v4, %v159_v3 }
  0xef   :  { %v716_v5 = vpop.eup %715  ;;  %v185_v9 = vadd.f32 1.0, %v714_v1  ;;  %v190_v24 = vmul.f32 %v182_v7, %v158_v6 }
  0xf0   :  { %v718_v10 = vpop.eup %717  ;;  %v187_v14 = vadd.f32 1.0, %v716_v5  ;;  %v192_v27 = vmul.f32 %v184_v12, %v160_v11 }
  0xf1   :  { %v720_v15 = vpop.eup %719  ;;  %v193_v17 = vmul.f32 %v185_v9, %v161_v8  ;;  %v186_v19 = vadd.f32 1.0, %v718_v10 }
  0xf2   :  { %v195_v21 = vmul.f32 %v187_v14, %v163_v13  ;;  %v188_v23 = vadd.f32 1.0, %v720_v15 }
  0xf3   :  { %v197_v25 = vpack.c.bf16 %v193_v17, %v189_v16  ;;  %v194_v26 = vmul.f32 %v186_v19, %v162_v18 }
  0xf4   :  { %v199_v28 = vpack.c.bf16 %v195_v21, %v191_v20  ;;  %v196_v29 = vmul.f32 %v188_v23, %v164_v22 }
  0xf5   :  { %v198_v30 = vpack.c.bf16 %v194_v26, %v190_v24 }
  0xf6   :  { %v200_v31 = vpack.c.bf16 %v196_v29, %v192_v27 }
  0xf7   :  { %489 = vmatprep.mubr.bf16.mxu0 %v198_v30 }
  0xf8   :  { %530 = vmatprep.mubr.bf16.mxu1 %v200_v31  ;;  %490 = vmatmul.mubr.bf16.vlgmr.msra.gmra.mrb[4].mxu0 %v197_v25 }
  0xf9   :  { %531 = vmatmul.mubr.bf16.vlgmr.msra.gmra.mrb[4].mxu1 %v199_v28 }
 0x1cb   :  { %v629_v32 = vpop.f32.mrb[4].mxu0 }
 0x1cc   :  { %v651_v33 = vpop.f32.mrb[4].mxu1  ;;  %v630_v34 = vpop.f32.mrb[5].mxu0 }
 0x1cd   :  { %v631_v35 = vadd.f32 %v630_v34, %v629_v32  ;;  %v652_v36 = vpop.f32.mrb[5].mxu1  ;;  %v632_v37 = vpop.f32.mrb[6].mxu0 }
 0x1ce   :  { %v653_v38 = vadd.f32 %v652_v36, %v651_v33  ;;  %v654_v39 = vpop.f32.mrb[6].mxu1  ;;  %v633_v40 = vpop.f32.mrb[7].mxu0 }
 0x1cf   :  { %v634_v41 = vadd.f32 %v633_v40, %v632_v37  ;;  %v655_v42 = vpop.f32.mrb[7].mxu1 }
 0x1d0   :  { %v533_v43 = vadd.f32 %v653_v38, %v631_v35  ;;  %v656_v44 = vadd.f32 %v655_v42, %v654_v39 }
 0x1d2   :  { %543 = vst.msk [vmem:[#allocation2] sm:$0xff] %vm67_vm0, %v533_v43  ;;  %v536_v45 = vadd.f32 %v656_v44, %v634_v41 }
 0x1d4   :  { %544 = vst.msk [vmem:[#allocation2 + $0x8] sm:$0xff] %vm67_vm0, %v536_v45 }
 0x1d5   :  { %732 = shalt.err (!%p729_p4)
}
 0x1d6   :  { %s733_s13 = scalar_lea.hbm %s914_s3, 256 }
 0x1d7   :  { %p734_p5 = scmp.ne.s32.totalorder %s914_s3, %s733_s13  ;;  %p737_p6 = scmp.lt.u32.totalorder %s733_s13, %s914_s3 }
 0x1d9   :  { %p739_p7 = pnand %p737_p6, %p734_p5 }
 0x1db   :  { %742 = shalt.err (!%p739_p7)
}
 0x1dc   :  { %s747_s18 = smov 128   ;;  %s748_s19 = smov 8  }
 0x1dd   :  { %566 = dma.vmem_to_hbm [thread:$0]  %s561_s0, 256, %s914_s3, [#allocation3], %s747_s18, %s747_s18, %s748_s19  }
 0x1de   :  { %743 = dma.done.wait [#allocation3], 256  }
 0x1df   :  { %744 = vsyncadd [#allocation3], 4294967040 }
 0x1e0   :  { %570 = vsyncpa [#allocation3], 1 }

</bundles_post_ra>
